<compile_context>
chip_gen: v5e
topology: v5e:2x2
jax: 0.10.0
libtpu: 0.0.40
codegen_flags: <defaults>
</compile_context>

<pallas_src>
import functools

import jax
import jax.numpy as jnp
from jax import lax
from jax.experimental import pallas as pl
from jax.experimental.pallas import tpu as pltpu


def _channel_attention_kernel(x_ref, *rest, hw, hw_tile, nk_per_core,
                              mask_from, fuse_fc):
    """One (core-split, batch-tile, hw-tile) grid step.

    x_ref: (bt, C, hw_tile) activation slab.
    If fuse_fc: rest = (w1t, b1, w2t, b2, o_ref, acc_ref) and the finalize
    step writes sigmoid(fc2(relu(fc1(sum)))) to o_ref[(1, bt, C)].
    Otherwise:  rest = (o_ref, acc_ref) and the finalize step writes the raw
    per-core partial sums (the fc runs in the wrapper).
    acc_ref: (bt, C) float32 running per-channel sum (VMEM scratch), resident
    across the (arbitrary) HW axis.
    """
    if fuse_fc:
        w1t_ref, b1_ref, w2t_ref, b2_ref, o_ref, acc_ref = rest
    else:
        o_ref, acc_ref = rest

    c = pl.program_id(0)                      # core-split slice of the HW axis
    k = pl.program_id(2)                      # HW tile within this slice
    g = c * nk_per_core + k                   # global HW-tile index

    @pl.when(k == 0)
    def _init():
        acc_ref[...] = jnp.zeros_like(acc_ref)

    def _accumulate(masked):
        x = x_ref[...].astype(jnp.float32)                    # (bt, C, hw_tile)
        if masked:
            # Tail (or phantom) tile: keep padded lanes out of the sum.
            lane = lax.broadcasted_iota(jnp.int32, x.shape, 2)
            valid = (g * hw_tile + lane) < hw
            x = jnp.where(valid, x, 0.0)
        acc_ref[...] += jnp.sum(x, axis=-1)                   # (bt, C)

    if mask_from is None:
        # No tile can ever be padded: plain sum on every step.
        _accumulate(False)
    else:
        # Interior tiles: plain sum (no mask VPU work).  Only the tail /
        # phantom tiles (g >= mask_from) pay for the iota/compare/select.
        @pl.when(g < mask_from)
        def _plain():
            _accumulate(False)

        @pl.when(g >= mask_from)
        def _masked():
            _accumulate(True)

    @pl.when(k == pl.num_programs(2) - 1)
    def _finalize():
        if fuse_fc:
            pooled = acc_ref[...]             # sum; 1/HW is folded into w1t
            h = jnp.dot(pooled, w1t_ref[...],
                        preferred_element_type=jnp.float32) + b1_ref[...]
            h = jnp.maximum(h, 0.0)           # ReLU
            y = jnp.dot(h, w2t_ref[...],
                        preferred_element_type=jnp.float32) + b2_ref[...]
            o_ref[0, :, :] = jax.nn.sigmoid(y).astype(o_ref.dtype)
        else:
            o_ref[0, :, :] = acc_ref[...].astype(o_ref.dtype)


def _round_up(x, m):
    return ((x + m - 1) // m) * m


def _vmem_plan_budgets():
    """Generation-aware (per-input-buffer slab budget, vmem-limit cap)."""
    vmem_physical = None
    try:
        vmem_physical = pltpu.get_tpu_info().vmem_capacity_bytes
    except Exception:
        vmem_physical = None
    if vmem_physical is None:
        vmem_physical = 64 * 1024 * 1024                 # conservative default
    if vmem_physical >= 100 * 1024 * 1024:               # v5e / v6e: 128 MiB
        return 24 * 1024 * 1024, 96 * 1024 * 1024
    # v7x-class parts: 64 MiB per TensorCore -> tighter plan with headroom.
    return 14 * 1024 * 1024, 48 * 1024 * 1024


def _plan_tiles(B, C, HW, itemsize, slab_budget, max_hw_tile=None):
    """Co-derive (bt, hw_tile, nc) so ONE input buffer always fits slab_budget.

    bt is a multiple of 8 (or == B) so the (bt, C) output block is legal;
    hw_tile is a multiple of 128 (or == HW) so DMA runs stay lane-dense.
    Preference: full-HW tiles (shrinking bt first); otherwise the minimum
    batch tile with the largest 128-aligned hw_tile that fits (long DMA runs
    matter more than batch-amortized step overhead).
    """
    bt_min = B if B < 8 else 8
    hw_cap = HW
    if max_hw_tile is not None and max_hw_tile < HW:
        hw_cap = max(128, (max_hw_tile // 128) * 128)

    bytes_per_lane = C * itemsize                        # per batch row, per HW elem

    if hw_cap == HW and bt_min * bytes_per_lane * HW <= slab_budget:
        # Whole HW extent in one tile; grow the batch tile under the budget.
        hw_tile = HW
        cap_rows = slab_budget // (bytes_per_lane * HW)
        bt = B if cap_rows >= B else max(bt_min, (cap_rows // 8) * 8)
        # Keep >= 2 batch tiles for larger B so megacore can shard the batch.
        if bt == B and B >= 16:
            half = _round_up((B + 1) // 2, 8)
            if half < B:
                bt = half
    else:
        # HW must be tiled: take the minimum batch tile and the largest
        # lane-dense hw_tile that fits the budget.
        bt = bt_min
        cap_lanes = slab_budget // max(1, bt * bytes_per_lane)
        hw_tile = max(128, (min(cap_lanes, hw_cap) // 128) * 128)
        if HW <= 128:
            # Degenerate case (tiny HW, enormous C): can't tile below one
            # lane group; vmem_limit is derived from the actual plan below.
            # TODO(synk): tile the channel axis if this ever exceeds VMEM.
            hw_tile = HW

    nkt = pl.cdiv(HW, hw_tile)
    nb = pl.cdiv(B, bt)

    # If the batch axis gives no parallelism, make sure the HW axis has >= 2
    # tiles so it can be split across v7x's two TensorCores.
    if nb == 1 and nkt == 1 and HW >= 1024:
        hw_tile = _round_up(pl.cdiv(HW, 2), 128)
        nkt = pl.cdiv(HW, hw_tile)
    nc = 2 if (nb == 1 and nkt >= 2) else 1
    return bt, hw_tile, nc


def channel_attention(x, w1, b1, w2, b2, *, max_hw_tile=None):
    """x: (B, C, H, W). w1: (Cr, C), b1: (Cr,), w2: (C, Cr), b2: (C,).
    Returns (B, C, 1, 1), matching the PyTorch module.
    max_hw_tile (multiple of 128) is an optional override for testing."""
    B, C, H, W = x.shape
    Cr = w1.shape[0]
    HW = H * W

    x2 = x.reshape(B, C, HW)
    itemsize = x2.dtype.itemsize

    slab_budget, vmem_cap_limit = _vmem_plan_budgets()
    bt, hw_tile, nc = _plan_tiles(B, C, HW, itemsize, slab_budget, max_hw_tile)

    nkt = pl.cdiv(HW, hw_tile)            # total HW tiles
    nb = pl.cdiv(B, bt)                   # batch tiles
    nk_per_core = pl.cdiv(nkt, nc)        # HW tiles per core-split slice
    fuse_fc = (nc == 1)
    out_dtype = x.dtype if fuse_fc else jnp.float32

    # Masking plan: only the tail tile (HW % hw_tile != 0) and, when nc == 2
    # with an odd tile count, the single phantom tile need masking.
    max_g = nc * nk_per_core - 1
    if (HW % hw_tile) != 0:
        mask_from = nkt - 1
    elif max_g >= nkt:
        mask_from = nkt
    else:
        mask_from = None

    kernel = functools.partial(
        _channel_attention_kernel, hw=HW, hw_tile=hw_tile,
        nk_per_core=nk_per_core, mask_from=mask_from, fuse_fc=fuse_fc)

    # Activation spec.  The clamp only matters for the (fully masked) phantom
    # tile when nc == 2 and nkt is odd.
    x_spec = pl.BlockSpec(
        (bt, C, hw_tile),
        lambda c, b, k: (b, 0, jnp.minimum(c * nk_per_core + k, nkt - 1)))

    if fuse_fc:
        # Hoist the weight transposes out of the kernel and fold the pooling
        # scale (1/HW) into the first weight: the kernel is sum-then-matmul.
        w1t = (w1.T / jnp.float32(HW)).astype(jnp.float32)    # (C, Cr)
        w2t = w2.T.astype(jnp.float32)                        # (Cr, C)
        b1r = b1.reshape(1, Cr).astype(jnp.float32)
        b2r = b2.reshape(1, C).astype(jnp.float32)
        in_specs = [
            x_spec,
            pl.BlockSpec((C, Cr), lambda c, b, k: (0, 0)),
            pl.BlockSpec((1, Cr), lambda c, b, k: (0, 0)),
            pl.BlockSpec((Cr, C), lambda c, b, k: (0, 0)),
            pl.BlockSpec((1, C), lambda c, b, k: (0, 0)),
        ]
        args = (x2, w1t, b1r, w2t, b2r)
        weight_bytes = (C * Cr + Cr + Cr * C + C) * 4
        flops = B * C * HW + 4 * B * C * Cr
        transcendentals = B * C
    else:
        in_specs = [x_spec]
        args = (x2,)
        weight_bytes = 0
        flops = B * C * HW
        transcendentals = 0

    # vmem_limit derived from the actual plan (2x-buffered input slab,
    # weights, accumulator, 2x-buffered output block, headroom), capped per
    # generation.
    input_slab = bt * C * hw_tile * itemsize
    acc_bytes = bt * C * 4
    out_block_bytes = bt * C * jnp.dtype(out_dtype).itemsize
    plan_bytes = (2 * input_slab + 2 * weight_bytes + acc_bytes
                  + 2 * out_block_bytes + 2 * 1024 * 1024)
    vmem_limit = int(min(vmem_cap_limit, max(plan_bytes, 8 * 1024 * 1024)))

    cost = pl.CostEstimate(
        flops=int(flops),
        transcendentals=int(transcendentals),
        bytes_accessed=int(x2.size * itemsize + weight_bytes
                           + nc * B * C * jnp.dtype(out_dtype).itemsize),
    )

    # Note on partial batch tiles (B % bt != 0): the padded rows of the last
    # batch block accumulate padding garbage and pass through the fc/sigmoid,
    # but Pallas drops their writeback, so the visible output is correct.
    out = pl.pallas_call(
        kernel,
        out_shape=jax.ShapeDtypeStruct((nc, B, C), out_dtype),
        grid_spec=pltpu.PrefetchScalarGridSpec(
            num_scalar_prefetch=0,
            grid=(nc, nb, nk_per_core),
            in_specs=in_specs,
            out_specs=pl.BlockSpec((1, bt, C), lambda c, b, k: (c, b, 0)),
            scratch_shapes=[pltpu.VMEM((bt, C), jnp.float32)],
        ),
        compiler_params=pltpu.CompilerParams(
            dimension_semantics=("parallel", "parallel", "arbitrary"),
            vmem_limit_bytes=vmem_limit,
        ),
        cost_estimate=cost,
    )(*args)

    if fuse_fc:
        y = out[0]                                            # (B, C), sigmoid applied
    else:
        # Combine the per-core partial sums and run the tiny fc/sigmoid here.
        pooled = out.sum(axis=0) / jnp.float32(HW)            # (B, C) mean, f32
        h = jnp.maximum(pooled @ w1.astype(jnp.float32).T + b1.astype(jnp.float32), 0.0)
        y = jax.nn.sigmoid(h @ w2.astype(jnp.float32).T + b2.astype(jnp.float32))
        y = y.astype(x.dtype)

    return y.reshape(B, C, 1, 1)


def _reference(x, w1, b1, w2, b2):
    # Pure-JAX reference mirroring the PyTorch forward.
    pooled = jnp.mean(x.astype(jnp.float32), axis=(2, 3))     # (B, C)
    h = jnp.maximum(pooled @ w1.T + b1, 0.0)                  # (B, Cr)
    y = jax.nn.sigmoid(h @ w2.T + b2)                         # (B, C)
    return y[:, :, None, None].astype(x.dtype)


if __name__ == "__main__":
    key = jax.random.PRNGKey(0)

    def _make(B, C, H, W, ratio=8):
        Cr = max(1, C // ratio)
        kx, kw1, kb1, kw2, kb2 = jax.random.split(key, 5)
        x = jax.random.normal(kx, (B, C, H, W), dtype=jnp.float32)
        # Shapes match nn.Conv2d(C, Cr, 1).weight squeezed to (Cr, C), etc.
        w1 = jax.random.normal(kw1, (Cr, C), dtype=jnp.float32) * 0.1
        b1 = jax.random.normal(kb1, (Cr,), dtype=jnp.float32) * 0.1
        w2 = jax.random.normal(kw2, (C, Cr), dtype=jnp.float32) * 0.1
        b2 = jax.random.normal(kb2, (C,), dtype=jnp.float32) * 0.1
        return x, w1, b1, w2, b2

    # 1) Primary case (in_planes=32, ratio=8): single-tile fused path.
    x, w1, b1, w2, b2 = _make(2, 32, 16, 16)
    out = jax.block_until_ready(channel_attention(x, w1, b1, w2, b2))
    ref = _reference(x, w1, b1, w2, b2)
    assert out.shape == (2, 32, 1, 1), out.shape
    assert jnp.allclose(out, ref, atol=1e-5, rtol=1e-5), \
        float(jnp.max(jnp.abs(out - ref)))

    # 2) Batch-tiled fused path with a partial (masked) tail HW tile.
    x, w1, b1, w2, b2 = _make(16, 32, 20, 20)
    out = jax.block_until_ready(channel_attention(x, w1, b1, w2, b2, max_hw_tile=256))
    ref = _reference(x, w1, b1, w2, b2)
    assert jnp.allclose(out, ref, atol=1e-5, rtol=1e-5), \
        float(jnp.max(jnp.abs(out - ref)))

    # 3) Small-batch core-split path (per-slice partial sums + wrapper fc),
    #    including the masked tail tile.
    x, w1, b1, w2, b2 = _make(2, 32, 20, 20)
    out = jax.block_until_ready(channel_attention(x, w1, b1, w2, b2, max_hw_tile=128))
    ref = _reference(x, w1, b1, w2, b2)
    assert jnp.allclose(out, ref, atol=1e-5, rtol=1e-5), \
        float(jnp.max(jnp.abs(out - ref)))

    print("KERNEL_OK")
</pallas_src>

<mosaic_0001>
module attributes {stable_mosaic.version = 11 : i64} {
  func.func @_channel_attention_kernel(%arg0: i32, %arg1: i32, %arg2: i32, %arg3: memref<2x32x256xf32, #tpu.memory_space<vmem>>, %arg4: memref<32x4xf32, #tpu.memory_space<vmem>>, %arg5: memref<1x4xf32, #tpu.memory_space<vmem>>, %arg6: memref<4x32xf32, #tpu.memory_space<vmem>>, %arg7: memref<1x32xf32, #tpu.memory_space<vmem>>, %arg8: memref<1x2x32xf32, #tpu.memory_space<vmem>>, %arg9: memref<2x32xf32, #tpu.memory_space<vmem>>) attributes {dimension_semantics = [#tpu.dimension_semantics<parallel>, #tpu.dimension_semantics<parallel>, #tpu.dimension_semantics<arbitrary>], iteration_bounds = array<i64: 1, 1, 1>, scalar_prefetch = 0 : i64, scratch_operands = 1 : i64, tpu.core_type = #tpu.core_type<tc>, window_params = [{transform_indices = @transform_0, window_bounds = array<i64: 2, 32, 256>}, {pipeline_mode = #tpu.pipeline_mode<synchronous>, transform_indices = @transform_1, window_bounds = array<i64: 32, 4>}, {pipeline_mode = #tpu.pipeline_mode<synchronous>, transform_indices = @transform_2, window_bounds = array<i64: 1, 4>}, {pipeline_mode = #tpu.pipeline_mode<synchronous>, transform_indices = @transform_3, window_bounds = array<i64: 4, 32>}, {pipeline_mode = #tpu.pipeline_mode<synchronous>, transform_indices = @transform_4, window_bounds = array<i64: 1, 32>}, {transform_indices = @transform_5, window_bounds = array<i64: 1, 2, 32>}]} {
    %c0_i32 = arith.constant 0 : i32
    %0 = arith.cmpi eq, %arg2, %c0_i32 : i32
    %1 = arith.extui %0 : i1 to i32
    %c0_i32_0 = arith.constant 0 : i32
    %2 = arith.cmpi ne, %1, %c0_i32_0 : i32
    scf.if %2 {
      %cst_9 = arith.constant 0.000000e+00 : f32
      %11 = vector.broadcast %cst_9 : f32 to vector<2x32xf32>
      %c0_10 = arith.constant 0 : index
      %c0_11 = arith.constant 0 : index
      %12 = vector.load %arg9[%c0_10, %c0_11] : memref<2x32xf32, #tpu.memory_space<vmem>>, vector<2x32xf32>
      tpu.vector_store %arg9[%c0_10, %c0_11], %11 {strides = array<i32>} : memref<2x32xf32, #tpu.memory_space<vmem>>, vector<2x32xf32>,
    } else {
    }
    %c0 = arith.constant 0 : index
    %c0_1 = arith.constant 0 : index
    %c0_2 = arith.constant 0 : index
    %3 = vector.load %arg3[%c0, %c0_1, %c0_2] : memref<2x32x256xf32, #tpu.memory_space<vmem>>, vector<2x32x256xf32>
    %c0_3 = arith.constant 0 : index
    %c0_4 = arith.constant 0 : index
    %4 = vector.load %arg9[%c0_3, %c0_4] : memref<2x32xf32, #tpu.memory_space<vmem>>, vector<2x32xf32>
    %cst = arith.constant dense<0.000000e+00> : vector<2x32xf32>
    %5 = vector.multi_reduction <add>, %3, %cst [2] : vector<2x32x256xf32> to vector<2x32xf32>
    %6 = arith.addf %4, %5 : vector<2x32xf32>
    %c0_5 = arith.constant 0 : index
    %c0_6 = arith.constant 0 : index
    %7 = vector.load %arg9[%c0_5, %c0_6] : memref<2x32xf32, #tpu.memory_space<vmem>>, vector<2x32xf32>
    tpu.vector_store %arg9[%c0_5, %c0_6], %6 {strides = array<i32>} : memref<2x32xf32, #tpu.memory_space<vmem>>, vector<2x32xf32>,
    %c0_i32_7 = arith.constant 0 : i32
    %8 = arith.cmpi eq, %arg2, %c0_i32_7 : i32
    %9 = arith.extui %8 : i1 to i32
    %c0_i32_8 = arith.constant 0 : i32
    %10 = arith.cmpi ne, %9, %c0_i32_8 : i32
    scf.if %10 {
      %c0_9 = arith.constant 0 : index
      %c0_10 = arith.constant 0 : index
      %11 = vector.load %arg9[%c0_9, %c0_10] : memref<2x32xf32, #tpu.memory_space<vmem>>, vector<2x32xf32>
      %c0_11 = arith.constant 0 : index
      %c0_12 = arith.constant 0 : index
      %12 = vector.load %arg4[%c0_11, %c0_12] : memref<32x4xf32, #tpu.memory_space<vmem>>, vector<32x4xf32>
      %cst_13 = arith.constant dense<0.000000e+00> : vector<2x4xf32>
      %13 = tpu.matmul %11, %12, %cst_13 {dimension_numbers = #tpu.dot_dimension_numbers<[1], [0], [0], [1], [0, 0, 1, 1], [], []>} : vector<2x32xf32>, vector<32x4xf32>, vector<2x4xf32> -> vector<2x4xf32>
      %c0_14 = arith.constant 0 : index
      %c0_15 = arith.constant 0 : index
      %14 = vector.load %arg5[%c0_14, %c0_15] : memref<1x4xf32, #tpu.memory_space<vmem>>, vector<1x4xf32>
      %15 = vector.broadcast %14 : vector<1x4xf32> to vector<2x4xf32>
      %16 = arith.addf %13, %15 : vector<2x4xf32>
      %cst_16 = arith.constant 0.000000e+00 : f32
      %17 = vector.broadcast %cst_16 : f32 to vector<2x4xf32>
      %18 = arith.maximumf %16, %17 : vector<2x4xf32>
      %c0_17 = arith.constant 0 : index
      %c0_18 = arith.constant 0 : index
      %19 = vector.load %arg6[%c0_17, %c0_18] : memref<4x32xf32, #tpu.memory_space<vmem>>, vector<4x32xf32>
      %cst_19 = arith.constant dense<0.000000e+00> : vector<2x32xf32>
      %20 = tpu.matmul %18, %19, %cst_19 {dimension_numbers = #tpu.dot_dimension_numbers<[1], [0], [0], [1], [0, 0, 1, 1], [], []>} : vector<2x4xf32>, vector<4x32xf32>, vector<2x32xf32> -> vector<2x32xf32>
      %c0_20 = arith.constant 0 : index
      %c0_21 = arith.constant 0 : index
      %21 = vector.load %arg7[%c0_20, %c0_21] : memref<1x32xf32, #tpu.memory_space<vmem>>, vector<1x32xf32>
      %22 = vector.broadcast %21 : vector<1x32xf32> to vector<2x32xf32>
      %23 = arith.addf %20, %22 : vector<2x32xf32>
      %24 = arith.negf %23 : vector<2x32xf32>
      %25 = math.exp %24 : vector<2x32xf32>
      %cst_22 = arith.constant 1.000000e+00 : f32
      %26 = vector.broadcast %cst_22 : f32 to vector<2x32xf32>
      %27 = arith.addf %26, %25 : vector<2x32xf32>
      %28 = arith.divf %26, %27 : vector<2x32xf32>
      %c0_23 = arith.constant 0 : index
      %c0_24 = arith.constant 0 : index
      %c0_25 = arith.constant 0 : index
      %29 = vector.load %arg8[%c0_23, %c0_24, %c0_25] : memref<1x2x32xf32, #tpu.memory_space<vmem>>, vector<1x2x32xf32>
      %30 = vector.shape_cast %29 : vector<1x2x32xf32> to vector<2x32xf32>
      %31 = vector.shape_cast %28 : vector<2x32xf32> to vector<1x2x32xf32>
      tpu.vector_store %arg8[%c0_23, %c0_24, %c0_25], %31 {strides = array<i32>} : memref<1x2x32xf32, #tpu.memory_space<vmem>>, vector<1x2x32xf32>,
    } else {
    }
    return
  }
  func.func @transform_0(%arg0: i32, %arg1: i32, %arg2: i32) -> (i32, i32, i32) {
    %c1_i32 = arith.constant 1 : i32
    %0 = arith.muli %arg0, %c1_i32 : i32
    %1 = arith.addi %0, %arg2 : i32
    %c0_i32 = arith.constant 0 : i32
    %2 = arith.minsi %1, %c0_i32 : i32
    %c0_i32_0 = arith.constant 0 : i32
    %c0_i32_1 = arith.constant 0 : i32
    return %arg1, %c0_i32_0, %2 : i32, i32, i32
  }
  func.func @transform_1(%arg0: i32, %arg1: i32, %arg2: i32) -> (i32, i32) {
    %c0_i32 = arith.constant 0 : i32
    %c0_i32_0 = arith.constant 0 : i32
    %c0_i32_1 = arith.constant 0 : i32
    return %c0_i32, %c0_i32_0 : i32, i32
  }
  func.func @transform_2(%arg0: i32, %arg1: i32, %arg2: i32) -> (i32, i32) {
    %c0_i32 = arith.constant 0 : i32
    %c0_i32_0 = arith.constant 0 : i32
    %c0_i32_1 = arith.constant 0 : i32
    return %c0_i32, %c0_i32_0 : i32, i32
  }
  func.func @transform_3(%arg0: i32, %arg1: i32, %arg2: i32) -> (i32, i32) {
    %c0_i32 = arith.constant 0 : i32
    %c0_i32_0 = arith.constant 0 : i32
    %c0_i32_1 = arith.constant 0 : i32
    return %c0_i32, %c0_i32_0 : i32, i32
  }
  func.func @transform_4(%arg0: i32, %arg1: i32, %arg2: i32) -> (i32, i32) {
    %c0_i32 = arith.constant 0 : i32
    %c0_i32_0 = arith.constant 0 : i32
    %c0_i32_1 = arith.constant 0 : i32
    return %c0_i32, %c0_i32_0 : i32, i32
  }
  func.func @transform_5(%arg0: i32, %arg1: i32, %arg2: i32) -> (i32, i32, i32) {
    %c0_i32 = arith.constant 0 : i32
    %c0_i32_0 = arith.constant 0 : i32
    return %arg0, %arg1, %c0_i32 : i32, i32, i32
  }
}

</mosaic_0001>

<bundles_post_ra>
// kernel: tpu_custom_call.1
= control target key start
LH: loop header
LB: loop body
LE: loop exit
PB: predicated region body
PF: predicated region fallthrough
CT: control target
= control target key end

     0   :  { %10 = vsyncpa [#allocation4], 0  ;;  %s371_s0 = inlined_call_operand.hbm [shape: f32[2,32,256], index: 0, kind: input, shape index: {}]   ;;  %s372_s1 = inlined_call_operand.vmem [shape: f32[32,4], index: 1, kind: input, shape index: {}]   ;;  %s373_s2 = inlined_call_operand.vmem [shape: f32[1,4], index: 2, kind: input, shape index: {}]   ;;  %s374_s3 = inlined_call_operand.vmem [shape: f32[4,32], index: 3, kind: input, shape index: {}]   ;;  %s375_s4 = inlined_call_operand.vmem [shape: f32[1,32], index: 4, kind: input, shape index: {}]   ;;  %s376_s5 = inlined_call_operand.hbm [shape: f32[1,2,32], index: 5, kind: output, shape index: {}]  }
   0x1   :  { %11 = vsyncpa [#allocation5], 0  ;;  %s22_s20 = sshll.u32 %s371_s0, 4  ;;  %s306_s21 = smov [#allocation3]   ;;  %s23_s20 = int_to_ptr.hbm [resolvable:$true] %s22_s20 }
   0x2   :  { %s24_s22 = sshll.u32 %s306_s21, 4  ;;  %s307_s23 = smov 256   ;;  %s25_s22 = int_to_ptr.vmem [resolvable:$true] %s24_s22 }
   0x3   :  { %s308_s24 = smov 16  }
   0x4   :  { %30 = dma.hbm_to_vmem [thread:$0]  %s23_s20, 2048, %s25_s22, [#allocation4], %s307_s23, %s307_s23, %s308_s24  }
   0x5   :  { %302 = dma.done.wait [#allocation4], 2048  }
   0x6   :  { %303 = vsyncadd [#allocation4], 4294965248  ;;  %v61_v0 = vld [vmem:[#allocation3 + $0x40] sm:$0xff]  ;;  %v62_v1 = vld [vmem:[#allocation3 + $0x48] sm:$0xff]  ;;  %vm51_vm0 = vcmask 254976   ;;  %v309_v24 = vmov 0.0   ;;  %v102_v30 = vlaneseq }
   0x7   :  { %v53_v2 = vld [vmem:[#allocation3] sm:$0xff]  ;;  %v82_v3 = vadd.f32 %v62_v1, %v61_v0  ;;  %v54_v4 = vld [vmem:[#allocation3 + $0x8] sm:$0xff]  ;;  %v63_v9 = vld [vmem:[#allocation3 + $0x50] sm:$0xff]  ;;  %52 = vst.msk [vmem:[#allocation2] sm:$0x3] %vm51_vm0, %v309_v24  ;;  %vm107_vm1 = vcmask 130112  }
   0x8   :  { %v57_v5 = vld [vmem:[#allocation3 + $0x20] sm:$0xff]  ;;  %v58_v6 = vld [vmem:[#allocation3 + $0x28] sm:$0xff]  ;;  %v70_v7 = vadd.f32 %v54_v4, %v53_v2  ;;  %v64_v10 = vld [vmem:[#allocation3 + $0x58] sm:$0xff]  ;;  %v103_v33 = vand.u32 127, %v102_v30  ;;  %vm111_vm2 = vcmask 195712   ;;  %vm115_vm3 = vcmask 261312  }
   0x9   :  { %v76_v8 = vadd.f32 %v58_v6, %v57_v5  ;;  %83 = vadd.xlane.f32.xlu1 %v82_v3  ;;  %v55_v11 = vld [vmem:[#allocation3 + $0x10] sm:$0xff]  ;;  %v56_v12 = vld [vmem:[#allocation3 + $0x18] sm:$0xff]  ;;  %v65_v13 = vld [vmem:[#allocation3 + $0x60] sm:$0xff]  ;;  %v85_v15 = vadd.f32 %v64_v10, %v63_v9  ;;  %vm124_vm4 = vcmask 1041409   ;;  %vm142_vm5 = vcmask 261120  }
   0xa   :  { %71 = vadd.xlane.f32.xlu0 %v70_v7  ;;  %v66_v14 = vld [vmem:[#allocation3 + $0x68] sm:$0xff]  ;;  %v73_v16 = vadd.f32 %v56_v12, %v55_v11  ;;  %v67_v18 = vld [vmem:[#allocation3 + $0x70] sm:$0xff]  ;;  %v68_v19 = vld [vmem:[#allocation3 + $0x78] sm:$0xff]  ;;  %v105_v34 = vadd.s32 4294967288, %v103_v33  ;;  %v109_v39 = vadd.s32 4294967280, %v103_v33  ;;  %v113_v42 = vadd.s32 4294967272, %v103_v33 }
   0xb   :  { %77 = vadd.xlane.f32.xlu2 %v76_v8  ;;  %v88_v17 = vadd.f32 %v66_v14, %v65_v13  ;;  %v59_v20 = vld [vmem:[#allocation3 + $0x30] sm:$0xff]  ;;  %v60_v21 = vld [vmem:[#allocation3 + $0x38] sm:$0xff]  ;;  %v91_v22 = vadd.f32 %v68_v19, %v67_v18  ;;  %v135_v27 = vld [vmem:[%s372_s1 + $0x8] sm:$0xff]  ;;  %vm176_vm6 = vcmask 1043456   ;;  %vm172_vm7 = vcmask 31744  }
   0xc   :  { %v79_v23 = vadd.f32 %v60_v21, %v59_v20  ;;  %v137_v25 = vld [vmem:[%s372_s1 + $0x18] sm:$0xff]  ;;  %v136_v26 = vld [vmem:[%s372_s1 + $0x10] sm:$0xff]  ;;  %v134_v28 = vld [vmem:[%s372_s1] sm:$0xff] }
   0xd   :  { %158 = vmatpush.msra.mxu0 %v137_v25  ;;  %v167_v60 = vld [vmem:[%s374_s3] sm:$0xf] }
   0xe   :  { %v69_v55 = vld [vmem:[#allocation2] sm:$0x3]  ;;  %240 = vmatpush.msk.msra.mxu1 %vm176_vm6, %v167_v60 }
   0xf   :  { %159 = vmatpush.msra.mxu0 %v136_v26  ;;  %v248_v61 = vld [vmem:[%s373_s2] ss:$0 sm:$0xff]  ;;  %s310_s2 = smov [#allocation6]  }
  0x10   :  { %v249_v1 = vld [vmem:[%s375_s4] ss:$0 sm:$0xff]  ;;  %s225_s3 = sshll.u32 %s310_s2, 4  ;;  %s227_s4 = sshll.u32 %s376_s5, 4  ;;  %s226_s3 = int_to_ptr.vmem [resolvable:$true] %s225_s3  ;;  %s228_s4 = int_to_ptr.hbm [resolvable:$true] %s227_s4 }
  0x11   :  { %86 = vadd.xlane.f32.xlu1 %v85_v15  ;;  %160 = vmatpush.msra.mxu0 %v135_v27 }
  0x12   :  { %74 = vadd.xlane.f32.xlu0 %v73_v16 }
  0x13   :  { %89 = vadd.xlane.f32.xlu2 %v88_v17  ;;  %161 = vmatpush.msra.mxu0 %v134_v28 }
  0x19   :  { %92 = vadd.xlane.f32.xlu1 %v91_v22 }
  0x1a   :  { %80 = vadd.xlane.f32.xlu0 %v79_v23 }
  0x7c   :  { %v84_v29 = vpop.xlane.xlu1 %83 }
  0x7d   :  { %v72_v31 = vpop.xlane.xlu0 %71  ;;  %v117_v41 = vperm.slane %v84_v29, %v103_v33 }
  0x7e   :  { %v78_v32 = vpop.xlane.xlu2 %77  ;;  %v104_v43 = vperm.slane %v72_v31, %v103_v33 }
  0x7f   :  { %v110_v48 = vperm.slane %v78_v32, %v109_v39 }
  0x84   :  { %v87_v35 = vpop.xlane.xlu1 %86 }
  0x85   :  { %v75_v36 = vpop.xlane.xlu0 %74  ;;  %v118_v37 = vperm.slane %v87_v35, %v105_v34 }
  0x86   :  { %v90_v38 = vpop.xlane.xlu2 %89  ;;  %v106_v40 = vperm.slane %v75_v36, %v105_v34 }
  0x87   :  { %v120_v44 = vperm.slane %v90_v38, %v109_v39  ;;  %v119_v45 = vsel %vm107_vm1, %v118_v37, %v117_v41 }
  0x88   :  { %v108_v46 = vsel %vm107_vm1, %v106_v40, %v104_v43 }
  0x89   :  { %v121_v51 = vsel %vm111_vm2, %v120_v44, %v119_v45  ;;  %v112_v54 = vsel %vm111_vm2, %v110_v48, %v108_v46 }
  0x8c   :  { %v93_v47 = vpop.xlane.xlu1 %92 }
  0x8d   :  { %v122_v49 = vperm.slane %v93_v47, %v113_v42  ;;  %v81_v50 = vpop.xlane.xlu0 %80 }
  0x8e   :  { %v114_v52 = vperm.slane %v81_v50, %v113_v42 }
  0x8f   :  { %v123_v53 = vsel %vm115_vm3, %v122_v49, %v121_v51 }
  0x90   :  { %v116_v56 = vsel %vm115_vm3, %v114_v52, %v112_v54 }
  0x91   :  { %v125_v57 = vsel %vm124_vm4, %v123_v53, %v116_v56 }
  0x92   :  { %v127_v58 = vadd.f32 %v125_v57, %v69_v55 }
  0x94   :  { %129 = vst.msk [vmem:[#allocation2] sm:$0x3] %vm51_vm0, %v127_v58 }
  0x9b   :  { %v133_v59 = vld [vmem:[#allocation2] sm:$0x3] }
  0x9c   :  { %239 = vmatmul.msk.f32.vlgmr.msra.gmra.mxu0 %vm142_vm5, %v133_v59 }
 0x119   :  { %v163_v62 = vpop.f32.mrf.mxu0 }
 0x11a   :  { %v164_v63 = vadd.f32 %v248_v61, %v163_v62 }
 0x11c   :  { %v166_v0 = vmax.f32 %v164_v63, 0.0 }
 0x11e   :  { %241 = vmatmul.msk.f32.vlgmr.msra.gmra.mxu1 %vm172_vm7, %v166_v0 }
 0x19b   :  { %v197_v2 = vpop.f32.mrf.mxu1 }
 0x19c   :  { %v198_v3 = vadd.f32 %v249_v1, %v197_v2 }
 0x19e   :  { %v242_v4 = vmul.f32 -1.442695, %v198_v3 }
 0x1a0   :  { %250 = vpow2.f32 %v242_v4 }
 0x1a6   :  { %v251_v5 = vpop.eup %250 }
 0x1a7   :  { %v203_v6 = vadd.f32 1.0, %v251_v5 }
 0x1a9   :  { %252 = vrcp.f32 %v203_v6  ;;  %v215_v10 = vand.u32 2147483648, %v203_v6  ;;  %v213_v12 = vand.u32 2147483647, %v203_v6  ;;  %vm209_vm9 = vweird.f32 %v203_v6 }
 0x1ab   :  { %v216_v14 = vor.u32 1.1754944e-38, %v215_v10  ;;  %vm214_vm11 = vcmp.eq.f32.partialorder %v213_v12, 8.507059e+37 }
 0x1af   :  { %v253_v7 = vpop.eup %252 }
 0x1b0   :  { %v205_v8 = vmul.f32 %v253_v7, %v203_v6  ;;  %vm210_vm8 = vweird.f32 %v253_v7 }
 0x1b1   :  { %vm211_vm10 = vmor %vm209_vm9, %vm210_vm8 }
 0x1b2   :  { %v206_v9 = vsub.f32 1.0, %v205_v8 }
 0x1b4   :  { %v207_v11 = vmul.f32 %v253_v7, %v206_v9 }
 0x1b6   :  { %v208_v13 = vadd.f32 %v253_v7, %v207_v11 }
 0x1b8   :  { %v212_v15 = vsel %vm211_vm10, %v253_v7, %v208_v13 }
 0x1b9   :  { %v217_v16 = vsel %vm214_vm11, %v216_v14, %v212_v15 }
 0x1ba   :  { %219 = vst.msk [vmem:[#allocation6] sm:$0x3] %vm51_vm0, %v217_v16 }
 0x1bb   :  { %230 = dma.vmem_to_hbm [thread:$0]  %s226_s3, 32, %s228_s4, [#allocation5]  }
 0x1bc   :  { %304 = dma.done.wait [#allocation5], 32  }
 0x1bd   :  { %305 = vsyncadd [#allocation5], 4294967264 }
 0x1be   :  { %235 = vsyncpa [#allocation4], 1 }
 0x1bf   :  { %236 = vsyncpa [#allocation5], 1 }

</bundles_post_ra>
